<compile_context>
chip_gen: v6e
topology: v6e:2x2x1
jax: 0.10.0
libtpu: 0.0.40
codegen_flags: <defaults>
</compile_context>

<pallas_src>
from dataclasses import dataclass

import jax
import jax.numpy as jnp
from jax.experimental import pallas as pl
from jax.experimental.pallas import tpu as pltpu


LANE = 128          # vreg lane width
SUBLANE = 8         # vreg sublane count (f32)
MAX_ROW_TILE = 512  # rows of 128 lanes per grid step (512*128*4B = 256 KiB/buffer)


@dataclass(kw_only=True)
class BaseScoreNetworkParameters:
    """Base hyper-parameters for score networks."""
    spatial_dimension: int = 3


def _check_batch_kernel(pos_ref, time_ref, ok_ref):
    """Range-check reduction kernel.

    pos_ref  : VMEM ref, (row_tile, 128) lane-dense tile of flattened positions
               (padded with an in-range value), native dtype.
    time_ref : VMEM ref, (B, 1) whole times array, native dtype.
    ok_ref   : SMEM ref, (2,) int32.  ok_ref[0] = all positions in [0,1),
               ok_ref[1] = all times in [0,1].
    """
    i = pl.program_id(0)

    # Initialize the accumulator flag and do the (tiny) time reduction once.
    @pl.when(i == 0)
    def _init():
        ok_ref[0] = jnp.int32(1)
        t = time_ref[...]
        t_mask = jnp.logical_and(t >= 0, t <= 1)   # native-dtype compare
        ok_ref[1] = jnp.min(t_mask.astype(jnp.int32))

    # Per-tile positions reduction, accumulated into the SMEM flag.
    pos = pos_ref[...]
    pos_mask = jnp.logical_and(pos >= 0, pos < 1)  # native-dtype compare
    tile_ok = jnp.min(pos_mask.astype(jnp.int32))
    ok_ref[0] = jnp.minimum(ok_ref[0], tile_ok)


@jax.jit
def _run_check_batch_kernel(positions, times):
    """Lane-dense, tiled validation: returns a (2,) int32 array [pos_ok, time_ok]."""
    total = positions.size
    rows = max(1, -(-total // LANE))
    row_tile = min(MAX_ROW_TILE, -(-rows // SUBLANE) * SUBLANE)
    padded_rows = -(-rows // row_tile) * row_tile
    pad_len = padded_rows * LANE - total

    flat = positions.reshape(-1)
    if pad_len:
        # Pad with an in-range value so padding never fails the [0,1) check.
        flat = jnp.pad(flat, (0, pad_len), constant_values=0.5)
    pos2d = flat.reshape(padded_rows, LANE)

    num_tiles = padded_rows // row_tile

    return pl.pallas_call(
        _check_batch_kernel,
        grid=(num_tiles,),
        in_specs=[
            pl.BlockSpec((row_tile, LANE), lambda i: (i, 0)),
            pl.BlockSpec(times.shape, lambda i: (0, 0)),
        ],
        out_specs=pl.BlockSpec(memory_space=pltpu.MemorySpace.SMEM),
        out_shape=jax.ShapeDtypeStruct((2,), jnp.int32),
        compiler_params=pltpu.CompilerParams(
            dimension_semantics=("arbitrary",)),
    )(pos2d, times)


class BaseScoreNetwork:
    """JAX/Pallas port of the abstract base score network."""

    position_key = "noisy_relative_positions"
    timestep_key = "time"

    def __init__(self, hyper_params: BaseScoreNetworkParameters):
        self._hyper_params = hyper_params
        self.spatial_dimension = hyper_params.spatial_dimension

    def _check_batch(self, batch):
        # --- static (shape / key) checks: plain Python, mirrors the torch asserts ---
        assert self.position_key in batch, (
            f"The positions should be present in the batch dictionary with key "
            f"'{self.position_key}'")
        positions = batch[self.position_key]
        position_shape = positions.shape
        batch_size = position_shape[0]
        assert len(position_shape) == 3 and position_shape[2] == self.spatial_dimension, (
            "The positions are expected to be in a tensor of shape "
            "[batch_size, number_of_atoms, 3]")

        assert self.timestep_key in batch, (
            f"The time step should be present in the batch dictionary with key "
            f"'{self.timestep_key}'")
        times = batch[self.timestep_key]
        time_shape = times.shape
        assert time_shape[0] == batch_size, (
            "the batch size dimension is inconsistent between positions and time steps.")
        assert len(time_shape) == 2 and time_shape[1] == 1, (
            "The time steps are expected to be in a tensor of shape [batch_size, 1]")

        # Degenerate (empty) batch: nothing to range-check.
        if batch_size == 0 or positions.size == 0:
            return

        # --- value-range checks: single Pallas reduction kernel, one host sync ---
        ok = jax.block_until_ready(_run_check_batch_kernel(positions, times))
        assert int(ok[0]) == 1, (
            "All components of the positions are expected to be in [0,1).")
        assert int(ok[1]) == 1, (
            "The times are expected to be normalized between 0 and 1.")

    def forward(self, batch):
        self._check_batch(batch)
        return self._forward_unchecked(batch)

    def _forward_unchecked(self, batch):
        # TODO(synk): abstract in the reference module (raises NotImplementedError);
        # no forward compute exists to translate to Pallas.
        raise NotImplementedError


if __name__ == "__main__":
    key = jax.random.PRNGKey(0)
    k_pos, k_time = jax.random.split(key)

    batch_size, num_atoms, spatial_dimension = 2, 8, 3
    # positions uniformly in [0, 1); times in [0, 1]
    positions = jax.random.uniform(
        k_pos, (batch_size, num_atoms, spatial_dimension), dtype=jnp.float32)
    times = jax.random.uniform(k_time, (batch_size, 1), dtype=jnp.float32)

    # Run the Pallas validation kernel directly once and block on the result.
    ok = jax.block_until_ready(_run_check_batch_kernel(positions, times))
    assert int(ok[0]) == 1 and int(ok[1]) == 1

    batch = {
        BaseScoreNetwork.position_key: positions,
        BaseScoreNetwork.timestep_key: times,
    }
    model = BaseScoreNetwork(BaseScoreNetworkParameters(spatial_dimension=spatial_dimension))

    # Full _check_batch path (the only compute in the base forward()).
    model._check_batch(batch)

    # The abstract tail of forward() must raise NotImplementedError, as in torch.
    try:
        model.forward(batch)
        raise AssertionError("expected NotImplementedError from _forward_unchecked")
    except NotImplementedError:
        pass

    print("KERNEL_OK")
</pallas_src>

<mosaic_0001>
module attributes {stable_mosaic.version = 11 : i64} {
  func.func @_check_batch_kernel(%arg0: i32, %arg1: memref<8x128xf32, #tpu.memory_space<vmem>>, %arg2: memref<2x1xf32, #tpu.memory_space<vmem>>, %arg3: memref<2xi32, #tpu.memory_space<smem>>) attributes {dimension_semantics = [#tpu.dimension_semantics<arbitrary>], iteration_bounds = array<i64: 1>, scalar_prefetch = 0 : i64, scratch_operands = 0 : i64, tpu.core_type = #tpu.core_type<tc>, window_params = [{transform_indices = @transform_0, window_bounds = array<i64: 8, 128>}, {pipeline_mode = #tpu.pipeline_mode<synchronous>, transform_indices = @transform_1, window_bounds = array<i64: 2, 1>}, {transform_indices = @transform_2, window_bounds = array<i64: 2>}]} {
    %c0_i32 = arith.constant 0 : i32
    %0 = arith.cmpi eq, %arg0, %c0_i32 : i32
    %1 = arith.extui %0 : i1 to i32
    %c0_i32_0 = arith.constant 0 : i32
    %2 = arith.cmpi ne, %1, %c0_i32_0 : i32
    scf.if %2 {
      %c1_i32 = arith.constant 1 : i32
      %c0_6 = arith.constant 0 : index
      %17 = memref.load %arg3[%c0_6] : memref<2xi32, #tpu.memory_space<smem>>
      memref.store %c1_i32, %arg3[%c0_6] : memref<2xi32, #tpu.memory_space<smem>>
      %c0_7 = arith.constant 0 : index
      %c0_8 = arith.constant 0 : index
      %18 = vector.load %arg2[%c0_7, %c0_8] : memref<2x1xf32, #tpu.memory_space<vmem>>, vector<2x1xf32>
      %cst_9 = arith.constant 0.000000e+00 : f32
      %19 = vector.broadcast %cst_9 : f32 to vector<2x1xf32>
      %20 = arith.cmpf oge, %18, %19 : vector<2x1xf32>
      %cst_10 = arith.constant 1.000000e+00 : f32
      %21 = vector.broadcast %cst_10 : f32 to vector<2x1xf32>
      %22 = arith.cmpf ole, %18, %21 : vector<2x1xf32>
      %23 = arith.andi %20, %22 : vector<2x1xi1>
      %24 = arith.extui %23 : vector<2x1xi1> to vector<2x1xi32>
      %25 = vector.shape_cast %24 : vector<2x1xi32> to vector<1x2x1xi32>
      %cst_11 = arith.constant dense<2147483647> : vector<1xi32>
      %26 = vector.multi_reduction <minsi>, %25, %cst_11 [1, 2] : vector<1x2x1xi32> to vector<1xi32>
      %27 = vector.shape_cast %26 : vector<1xi32> to vector<1x1x1xi32>
      %28 = vector.extract %27[0, 0, 0] : i32 from vector<1x1x1xi32>
      %c1 = arith.constant 1 : index
      %29 = memref.load %arg3[%c1] : memref<2xi32, #tpu.memory_space<smem>>
      memref.store %28, %arg3[%c1] : memref<2xi32, #tpu.memory_space<smem>>
    } else {
    }
    %c0 = arith.constant 0 : index
    %c0_1 = arith.constant 0 : index
    %3 = vector.load %arg1[%c0, %c0_1] : memref<8x128xf32, #tpu.memory_space<vmem>>, vector<8x128xf32>
    %cst = arith.constant 0.000000e+00 : f32
    %4 = vector.broadcast %cst : f32 to vector<8x128xf32>
    %5 = arith.cmpf oge, %3, %4 : vector<8x128xf32>
    %cst_2 = arith.constant 1.000000e+00 : f32
    %6 = vector.broadcast %cst_2 : f32 to vector<8x128xf32>
    %7 = arith.cmpf olt, %3, %6 : vector<8x128xf32>
    %8 = arith.andi %5, %7 : vector<8x128xi1>
    %9 = arith.extui %8 : vector<8x128xi1> to vector<8x128xi32>
    %10 = vector.shape_cast %9 : vector<8x128xi32> to vector<1x8x128xi32>
    %cst_3 = arith.constant dense<2147483647> : vector<1xi32>
    %11 = vector.multi_reduction <minsi>, %10, %cst_3 [1, 2] : vector<1x8x128xi32> to vector<1xi32>
    %12 = vector.shape_cast %11 : vector<1xi32> to vector<1x1x1xi32>
    %13 = vector.extract %12[0, 0, 0] : i32 from vector<1x1x1xi32>
    %c0_4 = arith.constant 0 : index
    %14 = memref.load %arg3[%c0_4] : memref<2xi32, #tpu.memory_space<smem>>
    %15 = arith.minsi %14, %13 : i32
    %c0_5 = arith.constant 0 : index
    %16 = memref.load %arg3[%c0_5] : memref<2xi32, #tpu.memory_space<smem>>
    memref.store %15, %arg3[%c0_5] : memref<2xi32, #tpu.memory_space<smem>>
    return
  }
  func.func @transform_0(%arg0: i32) -> (i32, i32) {
    %c0_i32 = arith.constant 0 : i32
    %c0_i32_0 = arith.constant 0 : i32
    return %arg0, %c0_i32 : i32, i32
  }
  func.func @transform_1(%arg0: i32) -> (i32, i32) {
    %c0_i32 = arith.constant 0 : i32
    %c0_i32_0 = arith.constant 0 : i32
    %c0_i32_1 = arith.constant 0 : i32
    return %c0_i32, %c0_i32_0 : i32, i32
  }
  func.func @transform_2(%arg0: i32) -> i32 {
    %c0_i32 = arith.constant 0 : i32
    %c0_i32_0 = arith.constant 0 : i32
    return %c0_i32 : i32
  }
}

</mosaic_0001>

<bundles_post_ra>
// kernel: _run_check_batch_kernel.1
= control target key start
LH: loop header
LB: loop body
LE: loop exit
PB: predicated region body
PF: predicated region fallthrough
CT: control target
= control target key end

     0   :  { %vm23_vm0 = vcmask 1024   ;;  %s142_s0 = inlined_call_operand.vmem [shape: f32[8,128], index: 0, kind: input, shape index: {}]   ;;  %s143_s1 = inlined_call_operand.vmem [shape: f32[2,1], index: 1, kind: input, shape index: {}]   ;;  %s144_s2 = inlined_call_operand.hbm [shape: s32[2], index: 2, kind: output, shape index: {}]  }
   0x1   :  { %v18_v0 = vld [vmem:[%s143_s1] sm:$0x3] }
   0x2   :  { %v51_v1 = vld [vmem:[%s142_s0] sm:$0xff]  ;;  %vm19_vm1 = vcmp.ge.f32.partialorder %v18_v0, 0.0  ;;  %vm20_vm2 = vcmp.le.f32.partialorder %v18_v0, 1.0 }
   0x3   :  { %vm52_vm3 = vcmp.ge.f32.partialorder %v51_v1, 0.0  ;;  %vm53_vm4 = vcmp.lt.f32.partialorder %v51_v1, 1.0 }
   0x4   :  { %7 = vsyncpa [#allocation3], 0  ;;  %v116_v2 = vmov 0   ;;  %s117_s13 = smov [#allocation2]  }
   0x5   :  { %vm21_vm5 = vmand %vm19_vm1, %vm20_vm2 }
   0x6   :  { %v22_v3 = vsel %vm21_vm5, 1, %v116_v2  ;;  %vm54_vm6 = vmand %vm52_vm3, %vm53_vm4 }
   0x7   :  { %v24_v4 = vsel %vm23_vm0, %v22_v3, 2147483647  ;;  %v55_v5 = vsel %vm54_vm6, 1, %v116_v2 }
   0x8   :  { %v26_v6 = vshra.s32 %v24_v4, 16  ;;  %v57_v7 = vshra.s32 %v55_v5, 16  ;;  %v25_v10 = vand.u32 65535, %v24_v4  ;;  %v56_v12 = vand.u32 65535, %v55_v5 }
   0xa   :  { %v28_v8 = vcvt.s32.f32 %v26_v6  ;;  %v59_v9 = vcvt.s32.f32 %v57_v7  ;;  %v27_v11 = vcvt.s32.f32 %v25_v10  ;;  %v58_v15 = vcvt.s32.f32 %v56_v12 }
   0xc   :  { %29 = vmin.xlane.f32.xlu0 %v28_v8 }
  0x10   :  { %60 = vmin.xlane.f32.xlu0 %v59_v9 }
  0x95   :  { %v30_v13 = vpop.xlane.xlu0 %29 }
  0x96   :  { %vm31_vm7 = vcmp.eq.f32.partialorder %v28_v8, %v30_v13  ;;  %v36_v18 = vcvt.f32.s32 %v30_v13 }
  0x97   :  { %v32_v14 = vsel %vm31_vm7, %v27_v11, inf }
  0x98   :  { %33 = vmin.xlane.f32.xlu1 %v32_v14  ;;  %v37_v20 = vshll.u32 %v36_v18, 16 }
  0x99   :  { %v61_v16 = vpop.xlane.xlu0 %60 }
  0x9a   :  { %vm62_vm8 = vcmp.eq.f32.partialorder %v59_v9, %v61_v16  ;;  %v67_v21 = vcvt.f32.s32 %v61_v16 }
  0x9b   :  { %v63_v17 = vsel %vm62_vm8, %v58_v15, inf }
  0x9c   :  { %64 = vmin.xlane.f32.xlu1 %v63_v17  ;;  %v68_v25 = vshll.u32 %v67_v21, 16 }
 0x121   :  { %v34_v19 = vpop.xlane.xlu1 %33 }
 0x122   :  { %v35_v22 = vcvt.f32.s32 %v34_v19 }
 0x124   :  { %v38_v23 = vadd.s32 %v37_v20, %v35_v22 }
 0x125   :  { %v65_v24 = vpop.xlane.xlu1 %64 }
 0x126   :  { %v39_v26 = vrot.slane %v38_v23, 4  ;;  %v66_v27 = vcvt.f32.s32 %v65_v24 }
 0x128   :  { %v69_v28 = vadd.s32 %v68_v25, %v66_v27  ;;  %vm40_vm9 = vcmp.lt.s32.totalorder %v38_v23, %v39_v26 }
 0x129   :  { %v41_v29 = vsel %vm40_vm9, %v38_v23, %v39_v26 }
 0x12a   :  { %v70_v30 = vrot.slane %v69_v28, 4  ;;  %v42_v31 = vrot.slane %v41_v29, 2 }
 0x12c   :  { %vm71_vm10 = vcmp.lt.s32.totalorder %v69_v28, %v70_v30  ;;  %vm43_vm11 = vcmp.lt.s32.totalorder %v41_v29, %v42_v31 }
 0x12d   :  { %v44_v32 = vsel %vm43_vm11, %v41_v29, %v42_v31  ;;  %v72_v33 = vsel %vm71_vm10, %v69_v28, %v70_v30 }
 0x12e   :  { %v45_v34 = vrot.slane %v44_v32, 1  ;;  %v73_v35 = vrot.slane %v72_v33, 2 }
 0x130   :  { %vm46_vm12 = vcmp.lt.s32.totalorder %v44_v32, %v45_v34  ;;  %vm74_vm13 = vcmp.lt.s32.totalorder %v72_v33, %v73_v35 }
 0x131   :  { %v47_v36 = vsel %vm46_vm12, %v44_v32, %v45_v34  ;;  %v75_v37 = vsel %vm74_vm13, %v72_v33, %v73_v35 }
 0x132   :  { %98 = vpush %v47_v36  ;;  %v76_v38 = vrot.slane %v75_v37, 1 }
 0x134   :  { %vm77_vm14 = vcmp.lt.s32.totalorder %v75_v37, %v76_v38 }
 0x135   :  { %v78_v39 = vsel %vm77_vm14, %v75_v37, %v76_v38 }
 0x136   :  { %100 = vpush %v78_v39 }
 0x163   :  { %s99_s0 = spop %98 }
 0x164   :  { %50 = sst [smem:[#allocation2 + $0x1]] %s99_s0 }
 0x167   :  { %s101_s1 = spop %100 }
 0x168   :  { %p105_p0 = scmp.gt.s32.totalorder %s101_s1, 1 }
 0x16a   :  { %s146_s1 = smov (%p105_p0, %s101_s1), 1 }
 0x16b   :  { %84 = sst [smem:[#allocation2]] %s146_s1 }
 0x16c   :  { %92 = dma.smem_to_hbm %s117_s13, 16, %s144_s2, [#allocation3]  }
 0x16d   :  { %114 = dma.done.wait [#allocation3], 16  }
 0x16e   :  { %115 = vsyncadd [#allocation3], 4294967280 }
 0x16f   :  { %96 = sfence }
 0x170   :  { %97 = vsyncpa [#allocation3], 1 }

</bundles_post_ra>
